<compile_context>
chip_gen: v5e
topology: v5e:2x2
jax: 0.10.0
libtpu: 0.0.40
codegen_flags: <defaults>
</compile_context>

<pallas_src>
import jax
import jax.numpy as jnp
from jax.experimental import pallas as pl
from jax.experimental.pallas import tpu as pltpu


def _round_up(x, m):
    return (x + m - 1) // m * m


def _vmem_budget_and_limit():
    """Generation-aware pipeline budget + scoped VMEM limit (bytes)."""
    try:
        cap = int(pltpu.get_tpu_info().vmem_capacity_bytes)
    except Exception:
        cap = 64 * 1024 * 1024  # conservative fallback == v7x per-core VMEM
    vmem_limit = min(cap * 3 // 4, 96 * 1024 * 1024)  # v5e/v6e: 96 MiB, v7x: 48 MiB
    budget = min(cap // 3, 40 * 1024 * 1024)          # v5e/v6e: ~40 MiB, v7x: ~21 MiB
    return budget, vmem_limit


def _choose_batch_tile(B, Sp, Dp, Cp, mm_itemsize, out_itemsize, budget):
    """Batch elements per grid step, sized from an explicit VMEM model."""
    # Per row of the flattened (B*Sp, Dp) slab the pipeline holds:
    #   hidden block (double-buffered, matmul dtype), the (rows, 1) span block
    #   (lane-padded to 128 in VMEM), the output block (double-buffered), plus
    #   the in-kernel f32 temporaries (h*ps product, logits, sigmoid result).
    per_row = (2 * Dp * mm_itemsize
               + 2 * 128 * 4
               + 2 * Cp * out_itemsize
               + Dp * 4
               + 2 * Cp * 4)
    # Constant-index weight/bias blocks (double-buffer allocation, fetched once
    # because their block index never changes): wcat + wobj + bias.
    fixed = 2 * 2 * Dp * Cp * mm_itemsize + 2 * 8 * Cp * 4
    rows_max = max(Sp, (budget - fixed) // per_row)
    bt_max = max(1, rows_max // Sp)

    divs = [d for d in range(1, B + 1) if B % d == 0 and d <= bt_max] or [1]
    best = max(divs)
    # Prefer an even number of grid steps (balances v7x's two TensorCores)
    # unless that would shrink the tile by more than 2x.
    even = [d for d in divs if (B // d) % 2 == 0]
    if even and max(even) * 2 >= best:
        best = max(even)
    return best


def _make_casrel_kernel(batch_tile, sp, dp, cp):
    rows = batch_tile * sp

    def kernel(h_ref, ps_ref, w_ref, wobj_ref, b_ref, out_ref):
        h = h_ref[...]         # (rows, Dp)  matmul dtype
        ps = ps_ref[...]       # (rows, 1)   f32 subject-span indicator (head+tail)
        w = w_ref[...]         # (Dp, Cp)    fused [wsh|wst|woh|wot]
        wobj = wobj_ref[...]   # (Dp, Cp)    same weights, subject columns zeroed
        bias = b_ref[...]      # (1, Cp)     fused bias, f32

        # One lane-dense MXU pass for all four heads.
        logits = jnp.dot(h, w, preferred_element_type=jnp.float32) + bias

        # Batched subject embeddings on VPU/XLU: mask-multiply (promotes to
        # f32), sublane reduce over the sequence axis, EUP approx reciprocal.
        h3 = h.reshape(batch_tile, sp, dp)
        ps3 = ps.reshape(batch_tile, sp, 1)
        sub_sum = jnp.sum(h3 * ps3, axis=1)                 # (Bt, Dp) f32
        denom = jnp.sum(ps3, axis=1)                        # (Bt, 1)  f32
        inv = pl.reciprocal(jnp.maximum(denom, 1.0), approx=True)
        sub_embed = sub_sum * inv                           # (Bt, Dp) f32

        # Single batched rank-1 correction matmul for the whole tile:
        # (h + sub_embed) @ Wobj == h @ Wobj + sub_embed @ Wobj; wobj already
        # has the subject columns zeroed, so no in-kernel column mask.
        corr = jnp.dot(sub_embed.astype(wobj.dtype), wobj,
                       preferred_element_type=jnp.float32)  # (Bt, Cp)

        corr_rows = jnp.broadcast_to(corr[:, None, :], (batch_tile, sp, cp))
        corr_rows = corr_rows.reshape(rows, cp)

        out_ref[...] = jax.nn.sigmoid(logits + corr_rows).astype(out_ref.dtype)

    return kernel


def casrel_forward(hidden, sub_head, sub_tail, params, *,
                   matmul_dtype=jnp.bfloat16, out_dtype=jnp.float32,
                   batch_tile=None):
    """Casrel heads on top of precomputed BERT hidden states.

    hidden: (B, S, D) f32 encoder output; sub_head/sub_tail: (B, S) multi-hot
    ground-truth subject-span vectors (as in the PyTorch forward()).
    Returns (pred_sub_heads (B,S,1), pred_sub_tails (B,S,1),
             pred_obj_heads (B,S,R), pred_obj_tails (B,S,R)).
    """
    B, S, D = hidden.shape
    R = params["woh"].shape[1]
    C = 2 + 2 * R

    mm_isz = jnp.dtype(matmul_dtype).itemsize
    out_isz = jnp.dtype(out_dtype).itemsize

    Dp = _round_up(D, 128)
    # Use 16-row sublane granularity whenever a packed (16-bit) dtype is in
    # play so every block is a whole packed tile.
    min_sublane = 16 if (mm_isz < 4 or out_isz < 4) else 8
    Sp = _round_up(S, min_sublane)
    Cp = _round_up(C, 128)

    # ---- fuse the four head weights/biases into one lane-dense slab ----
    wcat = jnp.zeros((Dp, Cp), jnp.float32)
    wcat = wcat.at[:D, 0:1].set(params["wsh"].astype(jnp.float32))
    wcat = wcat.at[:D, 1:2].set(params["wst"].astype(jnp.float32))
    wcat = wcat.at[:D, 2:2 + R].set(params["woh"].astype(jnp.float32))
    wcat = wcat.at[:D, 2 + R:2 + 2 * R].set(params["wot"].astype(jnp.float32))
    # Second view with the subject columns zeroed: used only for the rank-1
    # subject-embedding correction (kernel stays pure matmul + sigmoid).
    wobj = wcat.at[:, 0:2].set(0.0)
    wcat = wcat.astype(matmul_dtype)
    wobj = wobj.astype(matmul_dtype)

    bcat = jnp.zeros((1, Cp), jnp.float32)
    bcat = bcat.at[:, 0:1].set(params["bsh"].reshape(1, 1))
    bcat = bcat.at[:, 1:2].set(params["bst"].reshape(1, 1))
    bcat = bcat.at[:, 2:2 + R].set(params["boh"].reshape(1, R))
    bcat = bcat.at[:, 2 + R:2 + 2 * R].set(params["bot"].reshape(1, R))

    # ---- pad + flatten activations so every block/store is lane-dense ----
    h = jnp.pad(hidden.astype(jnp.float32),
                ((0, 0), (0, Sp - S), (0, Dp - D))).astype(matmul_dtype)
    h = h.reshape(B * Sp, Dp)

    pred_sub = sub_head.astype(jnp.float32) + sub_tail.astype(jnp.float32)
    ps = jnp.pad(pred_sub, ((0, 0), (0, Sp - S))).reshape(B * Sp, 1)

    budget, vmem_limit = _vmem_budget_and_limit()
    if batch_tile is None:
        batch_tile = _choose_batch_tile(B, Sp, Dp, Cp, mm_isz, out_isz, budget)
    assert B % batch_tile == 0, (B, batch_tile)
    grid = (B // batch_tile,)
    rows = batch_tile * Sp

    kernel = _make_casrel_kernel(batch_tile, Sp, Dp, Cp)

    slab = pl.pallas_call(
        kernel,
        out_shape=jax.ShapeDtypeStruct((B * Sp, Cp), out_dtype),
        grid_spec=pltpu.PrefetchScalarGridSpec(
            num_scalar_prefetch=0,
            grid=grid,
            in_specs=[
                pl.BlockSpec((rows, Dp), lambda i: (i, 0)),   # hidden slab
                pl.BlockSpec((rows, 1), lambda i: (i, 0)),    # subject spans
                pl.BlockSpec((Dp, Cp), lambda i: (0, 0)),     # fused weights
                pl.BlockSpec((Dp, Cp), lambda i: (0, 0)),     # obj-only weights
                pl.BlockSpec((1, Cp), lambda i: (0, 0)),      # fused bias
            ],
            out_specs=pl.BlockSpec((rows, Cp), lambda i: (i, 0)),
        ),
        compiler_params=pltpu.CompilerParams(
            dimension_semantics=("parallel",),
            vmem_limit_bytes=int(vmem_limit)),
    )(h, ps, wcat, wobj, bcat)

    # Split the lane-dense slab into the four predictions (wrapper-side).
    slab = slab.reshape(B, Sp, Cp)
    pred_sub_heads = slab[:, :S, 0:1]
    pred_sub_tails = slab[:, :S, 1:2]
    pred_obj_heads = slab[:, :S, 2:2 + R]
    pred_obj_tails = slab[:, :S, 2 + R:2 + 2 * R]
    return pred_sub_heads, pred_sub_tails, pred_obj_heads, pred_obj_tails


def casrel_reference(hidden, sub_head, sub_tail, params):
    """Pure-JAX reference mirroring the PyTorch forward."""
    psh = jax.nn.sigmoid(hidden @ params["wsh"] + params["bsh"])
    pst = jax.nn.sigmoid(hidden @ params["wst"] + params["bst"])
    sh = sub_head.astype(jnp.float32)[:, None, :]          # (B,1,S)
    st = sub_tail.astype(jnp.float32)[:, None, :]
    pred_sub = sh + st                                      # (B,1,S)
    sub_embed = jnp.einsum("bis,bsd->bid", pred_sub, hidden)
    sub_embed = sub_embed / jnp.sum(pred_sub, axis=-1)[:, :, None]
    h2 = sub_embed + hidden
    poh = jax.nn.sigmoid(h2 @ params["woh"] + params["boh"])
    pot = jax.nn.sigmoid(h2 @ params["wot"] + params["bot"])
    return psh, pst, poh, pot


if __name__ == "__main__":
    B, S, D, R = 4, 8, 32, 4   # batch, seq, hidden dim, num relations

    key = jax.random.PRNGKey(0)
    k_h, k_sh, k_st, k1, k2, k3, k4, k5, k6, k7, k8 = jax.random.split(key, 11)

    # Synthetic BERT hidden states (stands in for output[0] of TinyBERT).
    hidden = jax.random.normal(k_h, (B, S, D), dtype=jnp.float32)

    # Ground-truth subject head/tail indicator vectors (multi-hot floats).
    sub_head = (jax.random.uniform(k_sh, (B, S)) > 0.7).astype(jnp.float32)
    sub_tail = (jax.random.uniform(k_st, (B, S)) > 0.7).astype(jnp.float32)
    # ensure non-zero denominator (sum over seq), like real labels would be
    sub_head = sub_head.at[:, 0].set(1.0)
    sub_tail = sub_tail.at[:, 1].set(1.0)

    # Deterministic parameter init (Linear layers from __init__).
    params = {
        "wsh": jax.random.normal(k1, (D, 1), dtype=jnp.float32) * 0.05,
        "bsh": jax.random.normal(k2, (1, 1), dtype=jnp.float32) * 0.05,
        "wst": jax.random.normal(k3, (D, 1), dtype=jnp.float32) * 0.05,
        "bst": jax.random.normal(k4, (1, 1), dtype=jnp.float32) * 0.05,
        "woh": jax.random.normal(k5, (D, R), dtype=jnp.float32) * 0.05,
        "boh": jax.random.normal(k6, (1, R), dtype=jnp.float32) * 0.05,
        "wot": jax.random.normal(k7, (D, R), dtype=jnp.float32) * 0.05,
        "bot": jax.random.normal(k8, (1, R), dtype=jnp.float32) * 0.05,
    }

    refs = casrel_reference(hidden, sub_head, sub_tail, params)

    # Default path: bf16 MXU inputs (HBM-bound -> ~2x traffic win), f32 output.
    outs = jax.block_until_ready(
        casrel_forward(hidden, sub_head, sub_tail, params))
    for o, r in zip(outs, refs):
        assert o.shape == r.shape, (o.shape, r.shape)
        assert jnp.allclose(o, r, atol=3e-2, rtol=3e-2), \
            float(jnp.max(jnp.abs(o - r)))

    # f32 MXU path (tighter check of the kernel math).
    outs_f32 = jax.block_until_ready(
        casrel_forward(hidden, sub_head, sub_tail, params,
                       matmul_dtype=jnp.float32))
    for o, r in zip(outs_f32, refs):
        assert o.shape == r.shape, (o.shape, r.shape)
        assert jnp.allclose(o, r, atol=5e-3, rtol=5e-3), \
            float(jnp.max(jnp.abs(o - r)))

    # bf16 output slab (halves writeback traffic; most valuable on v7x).
    outs_bf = jax.block_until_ready(
        casrel_forward(hidden, sub_head, sub_tail, params,
                       out_dtype=jnp.bfloat16))
    for o, r in zip(outs_bf, refs):
        assert o.shape == r.shape, (o.shape, r.shape)
        assert o.dtype == jnp.bfloat16
        of = o.astype(jnp.float32)
        assert jnp.allclose(of, r, atol=3e-2, rtol=3e-2), \
            float(jnp.max(jnp.abs(of - r)))

    print("KERNEL_OK")
</pallas_src>

<mosaic_0001>
module attributes {stable_mosaic.version = 11 : i64} {
  func.func @kernel(%arg0: i32, %arg1: memref<32x128xbf16, #tpu.memory_space<vmem>>, %arg2: memref<32x1xf32, #tpu.memory_space<vmem>>, %arg3: memref<128x128xbf16, #tpu.memory_space<vmem>>, %arg4: memref<128x128xbf16, #tpu.memory_space<vmem>>, %arg5: memref<1x128xf32, #tpu.memory_space<vmem>>, %arg6: memref<32x128xf32, #tpu.memory_space<vmem>>) attributes {dimension_semantics = [#tpu.dimension_semantics<parallel>], iteration_bounds = array<i64: 2>, scalar_prefetch = 0 : i64, scratch_operands = 0 : i64, tpu.core_type = #tpu.core_type<tc>, window_params = [{transform_indices = @transform_0, window_bounds = array<i64: 32, 128>}, {transform_indices = @transform_1, window_bounds = array<i64: 32, 1>}, {pipeline_mode = #tpu.pipeline_mode<synchronous>, transform_indices = @transform_2, window_bounds = array<i64: 128, 128>}, {pipeline_mode = #tpu.pipeline_mode<synchronous>, transform_indices = @transform_3, window_bounds = array<i64: 128, 128>}, {pipeline_mode = #tpu.pipeline_mode<synchronous>, transform_indices = @transform_4, window_bounds = array<i64: 1, 128>}, {transform_indices = @transform_5, window_bounds = array<i64: 32, 128>}]} {
    %c0 = arith.constant 0 : index
    %c0_0 = arith.constant 0 : index
    %0 = vector.load %arg1[%c0, %c0_0] : memref<32x128xbf16, #tpu.memory_space<vmem>>, vector<32x128xbf16>
    %c0_1 = arith.constant 0 : index
    %c0_2 = arith.constant 0 : index
    %1 = vector.load %arg2[%c0_1, %c0_2] : memref<32x1xf32, #tpu.memory_space<vmem>>, vector<32x1xf32>
    %c0_3 = arith.constant 0 : index
    %c0_4 = arith.constant 0 : index
    %2 = vector.load %arg3[%c0_3, %c0_4] : memref<128x128xbf16, #tpu.memory_space<vmem>>, vector<128x128xbf16>
    %c0_5 = arith.constant 0 : index
    %c0_6 = arith.constant 0 : index
    %3 = vector.load %arg4[%c0_5, %c0_6] : memref<128x128xbf16, #tpu.memory_space<vmem>>, vector<128x128xbf16>
    %c0_7 = arith.constant 0 : index
    %c0_8 = arith.constant 0 : index
    %4 = vector.load %arg5[%c0_7, %c0_8] : memref<1x128xf32, #tpu.memory_space<vmem>>, vector<1x128xf32>
    %cst = arith.constant dense<0.000000e+00> : vector<32x128xf32>
    %5 = tpu.matmul %0, %2, %cst {dimension_numbers = #tpu.dot_dimension_numbers<[1], [0], [0], [1], [0, 0, 1, 1], [], []>} : vector<32x128xbf16>, vector<128x128xbf16>, vector<32x128xf32> -> vector<32x128xf32>
    %6 = vector.broadcast %4 : vector<1x128xf32> to vector<32x128xf32>
    %7 = arith.addf %5, %6 : vector<32x128xf32>
    %8 = vector.shape_cast %0 : vector<32x128xbf16> to vector<2x16x128xbf16>
    %9 = vector.shape_cast %1 : vector<32x1xf32> to vector<2x16x1xf32>
    %10 = arith.extf %8 : vector<2x16x128xbf16> to vector<2x16x128xf32>
    %11 = vector.broadcast %9 : vector<2x16x1xf32> to vector<2x16x128xf32>
    %12 = arith.mulf %10, %11 : vector<2x16x128xf32>
    %cst_9 = arith.constant dense<0.000000e+00> : vector<2x128xf32>
    %13 = vector.multi_reduction <add>, %12, %cst_9 [1] : vector<2x16x128xf32> to vector<2x128xf32>
    %cst_10 = arith.constant dense<0.000000e+00> : vector<2x1xf32>
    %14 = vector.multi_reduction <add>, %9, %cst_10 [1] : vector<2x16x1xf32> to vector<2x1xf32>
    %cst_11 = arith.constant 1.000000e+00 : f32
    %15 = vector.broadcast %cst_11 : f32 to vector<2x1xf32>
    %16 = arith.maximumf %14, %15 : vector<2x1xf32>
    %17 = tpu.reciprocal %16 {approx = true} : vector<2x1xf32> -> vector<2x1xf32>
    %18 = vector.broadcast %17 : vector<2x1xf32> to vector<2x128xf32>
    %19 = arith.mulf %13, %18 : vector<2x128xf32>
    %20 = arith.truncf %19 : vector<2x128xf32> to vector<2x128xbf16>
    %cst_12 = arith.constant dense<0.000000e+00> : vector<2x128xf32>
    %21 = tpu.matmul %20, %3, %cst_12 {dimension_numbers = #tpu.dot_dimension_numbers<[1], [0], [0], [1], [0, 0, 1, 1], [], []>} : vector<2x128xbf16>, vector<128x128xbf16>, vector<2x128xf32> -> vector<2x128xf32>
    %22 = vector.shape_cast %21 : vector<2x128xf32> to vector<2x1x128xf32>
    %23 = vector.shape_cast %22 : vector<2x1x128xf32> to vector<2x1x128xf32>
    %24 = vector.broadcast %23 : vector<2x1x128xf32> to vector<2x16x128xf32>
    %25 = vector.shape_cast %24 : vector<2x16x128xf32> to vector<32x128xf32>
    %26 = arith.addf %7, %25 : vector<32x128xf32>
    %27 = arith.negf %26 : vector<32x128xf32>
    %28 = math.exp %27 : vector<32x128xf32>
    %cst_13 = arith.constant 1.000000e+00 : f32
    %29 = vector.broadcast %cst_13 : f32 to vector<32x128xf32>
    %30 = arith.addf %29, %28 : vector<32x128xf32>
    %31 = arith.divf %29, %30 : vector<32x128xf32>
    %c0_14 = arith.constant 0 : index
    %c0_15 = arith.constant 0 : index
    %32 = vector.load %arg6[%c0_14, %c0_15] : memref<32x128xf32, #tpu.memory_space<vmem>>, vector<32x128xf32>
    tpu.vector_store %arg6[%c0_14, %c0_15], %31 {strides = array<i32>} : memref<32x128xf32, #tpu.memory_space<vmem>>, vector<32x128xf32>,
    return
  }
  func.func @transform_0(%arg0: i32) -> (i32, i32) {
    %c0_i32 = arith.constant 0 : i32
    %c0_i32_0 = arith.constant 0 : i32
    return %arg0, %c0_i32 : i32, i32
  }
  func.func @transform_1(%arg0: i32) -> (i32, i32) {
    %c0_i32 = arith.constant 0 : i32
    %c0_i32_0 = arith.constant 0 : i32
    return %arg0, %c0_i32 : i32, i32
  }
  func.func @transform_2(%arg0: i32) -> (i32, i32) {
    %c0_i32 = arith.constant 0 : i32
    %c0_i32_0 = arith.constant 0 : i32
    %c0_i32_1 = arith.constant 0 : i32
    return %c0_i32, %c0_i32_0 : i32, i32
  }
  func.func @transform_3(%arg0: i32) -> (i32, i32) {
    %c0_i32 = arith.constant 0 : i32
    %c0_i32_0 = arith.constant 0 : i32
    %c0_i32_1 = arith.constant 0 : i32
    return %c0_i32, %c0_i32_0 : i32, i32
  }
  func.func @transform_4(%arg0: i32) -> (i32, i32) {
    %c0_i32 = arith.constant 0 : i32
    %c0_i32_0 = arith.constant 0 : i32
    %c0_i32_1 = arith.constant 0 : i32
    return %c0_i32, %c0_i32_0 : i32, i32
  }
  func.func @transform_5(%arg0: i32) -> (i32, i32) {
    %c0_i32 = arith.constant 0 : i32
    %c0_i32_0 = arith.constant 0 : i32
    return %arg0, %c0_i32 : i32, i32
  }
}

</mosaic_0001>

<bundles_post_ra>
// kernel: tpu_custom_call.1
= control target key start
LH: loop header
LB: loop body
LE: loop exit
PB: predicated region body
PF: predicated region fallthrough
CT: control target
= control target key end

     0   :  { %10 = vsyncpa [#allocation3], 0  ;;  %s1345_s0 = inlined_call_operand.hbm [shape: bf16[64,128], index: 0, kind: input, shape index: {}]   ;;  %s1346_s1 = inlined_call_operand.vmem [shape: f32[64,1], index: 1, kind: input, shape index: {}]   ;;  %s1347_s2 = inlined_call_operand.vmem [shape: bf16[128,128], index: 2, kind: input, shape index: {}]   ;;  %s1348_s3 = inlined_call_operand.hbm [shape: bf16[128,128], index: 3, kind: input, shape index: {}]   ;;  %s1349_s4 = inlined_call_operand.vmem [shape: f32[1,128], index: 4, kind: input, shape index: {}]   ;;  %s1350_s5 = inlined_call_operand.hbm [shape: f32[64,128], index: 5, kind: output, shape index: {}]  }
   0x1   :  { %12 = vsyncpa [#allocation3 + $0x1], 0 }
   0x2   :  { %13 = vsyncpa [#allocation6], 0 }
   0x3   :  { %14 = vsyncpa [#allocation4], 0 }
   0x4   :  { %16 = vsyncpa [#allocation4 + $0x1], 0  ;;  %s1134_s18 = smov 0   ;;  %s1136_s19 = smov 0  }
   0x5   :  { %s1138_s20 = smov 0   ;;  %s1140_s21 = smov 0  }
   0x6 LB: > { %s1155_s22 = sadd.s32 4294967295, %s1096_s21   ;;  %s758_s23 = sadd.s32 4294967294, %s1096_s21   ;;  %s1096_s21 = sphi %s1140_s21, %s1366_s21   ;;  %s1092_s20 = sphi %s1138_s20, %s1365_s20   ;;  %s1088_s19 = sphi %s1136_s19, %s1364_s19   ;;  %s1084_s18 = sphi %s1134_s18, %s1363_s18  }
   0x7   : > { %p42_p0 = scmp.ne.s32.totalorder %s1088_s19, %s1084_s18  ;;  %p43_p1 = scmp.eq.s32.totalorder %s1155_s22, 0 }
   0x8   : > { %p155_p2 = scmp.eq.s32.totalorder %s1155_s22, 1  ;;  %p161_p3 = scmp.eq.s32.totalorder %s758_s23, 1 }
   0x9   : > { %p1164_p4 = por %p43_p1, %p42_p0  ;;  %p759_p5 = scmp.ge.s32.totalorder %s1096_s21, 1 }
   0xa   : > { %p1169_p6 = por %p161_p3, %p42_p0  ;;  %p168_p7 = scmp.lt.s32.totalorder %s1096_s21, 3 }
   0xb   : > { %s182_s28 = sshll.u32 %s1348_s3, 4  ;;  %s1098_s30 = smov [#allocation5]   ;;  %s183_s28 = int_to_ptr.hbm [resolvable:$true] %s182_s28 }
   0xc   : > { %p1177_p8 = pnand %p759_p5, %p168_p7  ;;  %s184_s6 = sshll.u32 %s1098_s30, 4  ;;  %s185_s6 = int_to_ptr.vmem [resolvable:$true] %s184_s6 }
   0xd   : > { %s1187_s7 = sadd.s32 1, %s1096_s21   ;;  %s1351_s8 = smov 64  }
   0xe   : > { %p888_p9 = pneg %p1177_p8  ;;  %s1100_s9 = smov 4  }
   0xf   : > { %s26_s10 = ssub.s32 %s1096_s21, %s1187_s7  ;;  %s29_s11 = sadd.s32 1, %s1092_s20 }
  0x10   : > { %p889_p10 = pnand %p888_p9, %p43_p1  ;;  %p27_p12 = scmp.eq.s32.totalorder %s26_s10, 0 }
  0x11   : > { %p36_p13 = scmp.ne.s32.totalorder %s1092_s20, %s1088_s19  ;;  %p37_p0 = scmp.eq.s32.totalorder %s1096_s21, 0 }
  0x12   : > { %891 = dma.hbm_to_vmem [thread:$0]  (!%p889_p10), %s183_s28, 1024, %s185_s6, [#allocation6], %s1351_s8, %s1351_s8, %s1100_s9  }
  0x13   : > { %s1199_s12 = scalar_select %p27_p12, %s1092_s20, %s29_s11  }
  0x14   : > { %p1203_p3 = por %p155_p2, %p36_p13  ;;  %p901_p5 = scmp.lt.s32.totalorder %s1096_s21, 2 }
  0x15   : > { %s201_s14 = sand.u32 1, %s1092_s20   ;;  %s852_s15 = sshll.u32 %s1096_s21, 4 }
  0x16   : > { %p38_p7 = por %p37_p0, %p36_p13  ;;  %s762_s16 = sshll.u32 %s201_s14, 4 }
  0x17   : > { %s210_s26 = scalar_lea.hbm %s1345_s0, %s852_s15  ;;  %s205_s28 = scalar_lea.vmem [#allocation2], %s762_s16 }
  0x18   : > { %s211_s27 = sshll.u32 %s210_s26, 4  ;;  %s213_s30 = sshll.u32 %s205_s28, 4  ;;  %s212_s27 = int_to_ptr.hbm [resolvable:$true] %s211_s27  ;;  %s214_s30 = int_to_ptr.vmem [resolvable:$true] %s213_s30 }
  0x19   : > { %p1213_p9 = pnand %p901_p5, %p38_p7  ;;  %s202_s10 = scalar_lea.sflag [#allocation3], %s201_s14 }
  0x1a   : > { %s996_s11 = sshra.s32 %s212_s27, 4  ;;  %s1003_s16 = scalar_lea.hbm %s1345_s0, 32  ;;  %s997_s11 = int_to_ptr.hbm [resolvable:$true] %s996_s11 }
  0x1b   : > { %s998_s8 = scalar_lea.hbm %s997_s11, 16  ;;  %p1000_p10 = pneg %p1213_p9 }
  0x1c   : > { %p999_p2 = scmp.ne.s32.totalorder %s997_s11, %s998_s8  ;;  %p1004_p0 = scmp.lt.s32.totalorder %s997_s11, %s1345_s0 }
  0x1d   : > { %p1005_p5 = scmp.lt.s32.totalorder %s1003_s16, %s998_s8 }
  0x1e   : > { %p1001_p12 = pnand %p1000_p10, %p999_p2 }
  0x1f   : > { %p1006_p7 = por %p1005_p5, %p1004_p0 }
  0x20   : > { %p1002_p13 = pneg %p1001_p12 }
  0x22   : > { %p1007_p11 = pnand %p1006_p7, %p1002_p13 }
  0x24   : > { %1010 = shalt.err (!%p1007_p11)
}
  0x25   : > { %s1357_s14 = smov 64   ;;  %234 = sbr.rel (%p1177_p8) target bundleno = 365 (0x16d), region = 40 }
  0x26   : > { %895 = dma.hbm_to_vmem [thread:$0]  (!%p1213_p9), %s212_s27, 256, %s214_s30, %s202_s10, %s1357_s14, %s1357_s14, %s1100_s9  }
  0x27   : > { %s1233_s28 = sand.u32 (!%p1177_p8), 1, %s1088_s19  }
  0x28   : > { %s766_s11 = sshll.u32 (!%p1177_p8), %s1233_s28, 4  ;;  %s237_s8 = scalar_lea.sflag (!%p1177_p8), [#allocation3], %s1233_s28 }
  0x29   : > { %s1237_s15 = scalar_lea.vmem (!%p1177_p8), [#allocation2], %s766_s11 }
  0x2a   : > { %1071 = dma.done.wait (%p1164_p4), %s237_s8, 256  }
  0x2b   : > { %1073 = vsyncadd (%p1164_p4), %s237_s8, 4294967040 }
  0x2c   : > { %1075 = dma.done.wait (%p43_p1), [#allocation6], 1024  }
  0x2d   : > { %1077 = vsyncadd (%p43_p1), [#allocation6], 4294966272  ;;  %s769_s29 = sshll.u32 %s1155_s22, 2  ;;  %v1101_v0 = vmov 0   ;;  %vm451_vm0 = vcmask 7168   ;;  %v862_v10 = vld [vmem:[%s1347_s2 + $0x38] sm:$0xff] }
  0x2e   : > { %943 = vset.pattern.permute.xlu1 %v1101_v0  ;;  %942 = vset.pattern.permute.xlu0 %v1101_v0  ;;  %p280_p8 = scmp.lt.s32.totalorder %s769_s29, 7  ;;  %v861_v13 = vld [vmem:[%s1347_s2 + $0x30] sm:$0xff]  ;;  %v860_v18 = vld [vmem:[%s1347_s2 + $0x28] sm:$0xff]  ;;  %v859_v22 = vld [vmem:[%s1347_s2 + $0x20] sm:$0xff]  ;;  %vm492_vm1 = vcmask 1041409   ;;  %s768_s16 = sshll.u32 %s1233_s28, 5 }
  0x2f   : > { %944 = vset.pattern.permute.xlu2 %v1101_v0  ;;  %872 = vmatpush.bf16.msra.mxu2 %v862_v10  ;;  %v858_v26 = vld [vmem:[%s1347_s2 + $0x18] sm:$0xff]  ;;  %v857_v32 = vld [vmem:[%s1347_s2 + $0x10] sm:$0xff]  ;;  %v856_v34 = vld [vmem:[%s1347_s2 + $0x8] sm:$0xff]  ;;  %s871_s23 = sshll.u32 %s1155_s22, 5  ;;  %s277_s11 = scalar_lea.vmem [#allocation7], %s768_s16 }
  0x30   : > { %s1368_s29 = smov (!%p280_p8, %s769_s29), 7  ;;  %390 = vmatpush.bf16.msra.mxu0 %v862_v10  ;;  %v870_v33 = vld [vmem:[#allocation5 + $0x38] sm:$0xff]  ;;  %v869_v35 = vld [vmem:[#allocation5 + $0x30] sm:$0xff]  ;;  %v855_v36 = vld [vmem:[%s1347_s2] sm:$0xff]  ;;  %s1299_s22 = scalar_lea.hbm %s1350_s5, %s871_s23 }
  0x31   : > { %s770_s9 = sshll.u32 %s1368_s29, 3  ;;  %544 = vmatpush.bf16.msra.mxu1 %v870_v33  ;;  %v868_v37 = vld [vmem:[#allocation5 + $0x28] sm:$0xff]  ;;  %v867_v39 = vld [vmem:[#allocation5 + $0x20] sm:$0xff]  ;;  %v866_v40 = vld [vmem:[#allocation5 + $0x18] sm:$0xff]  ;;  %s660_s8 = sshll.u32 %s277_s11, 4  ;;  %s661_s8 = int_to_ptr.vmem [resolvable:$true] %s660_s8 }
  0x32   : > { %s283_s24 = scalar_lea.vmem %s1346_s1, %s770_s9  ;;  %v854_v38 = vld [vmem:[%s1237_s15 + $0x8] sm:$0xff]  ;;  %v853_v41 = vld [vmem:[%s1237_s15] sm:$0xff]  ;;  %s662_s29 = sshll.u32 %s1299_s22, 4  ;;  %s663_s29 = int_to_ptr.hbm [resolvable:$true] %s662_s29 }
  0x33   : > { %v292_v1 = vld [vmem:[%s283_s24 + $0x10] sm:$0xff]  ;;  %v290_v2 = vld [vmem:[%s283_s24] sm:$0xff]  ;;  %v293_v3 = vld [vmem:[%s283_s24 + $0x18] sm:$0xff]  ;;  %873 = vmatpush.bf16.msra.mxu2 %v861_v13  ;;  %s648_s9 = scalar_lea.sflag [#allocation4], %s1233_s28  ;;  %s1040_s27 = sshra.s32 %s663_s29, 4  ;;  %s1041_s27 = int_to_ptr.hbm [resolvable:$true] %s1040_s27 }
  0x34   : > { %425 = vperm.xlu1 %943, %v292_v1   ;;  %v461_v4 = vsel %vm451_vm0, %v292_v1, 0.0  ;;  %415 = vperm.xlu0 %942, %v290_v2   ;;  %v452_v5 = vsel %vm451_vm0, %v290_v2, 0.0  ;;  %v462_v6 = vsel %vm451_vm0, %v293_v3, 0.0  ;;  %v291_v7 = vld [vmem:[%s283_s24 + $0x8] sm:$0xff]  ;;  %v865_v42 = vld [vmem:[#allocation5 + $0x10] sm:$0xff]  ;;  %v863_v44 = vld [vmem:[#allocation5] sm:$0xff]  ;;  %p1047_p9 = scmp.lt.s32.totalorder %s1041_s27, %s1350_s5 }
  0x35   : > { %v463_v8 = vadd.f32 %v462_v6, %v461_v4  ;;  %v453_v9 = vsel %vm451_vm0, %v291_v7, 0.0  ;;  %391 = vmatpush.bf16.msra.mxu0 %v861_v13  ;;  %545 = vmatpush.bf16.msra.mxu1 %v869_v35  ;;  %v864_v43 = vld [vmem:[#allocation5 + $0x8] sm:$0xff]  ;;  %v286_v48 = vld [vmem:[%s1237_s15] sm:$0xff]   ;;  %s1042_s30 = scalar_lea.hbm %s1041_s27, 32  ;;  %s1046_s10 = scalar_lea.hbm %s1350_s5, 64 }
  0x36   : > { %v454_v11 = vadd.f32 %v453_v9, %v452_v5  ;;  %v288_v47 = vld [vmem:[%s1237_s15 + $0x8] sm:$0xff]   ;;  %v409_v50 = vunpack.c.l.bf16 %v286_v48  ;;  %v410_v52 = vunpack.c.h.bf16 %v286_v48  ;;  %p1043_p1 = scmp.ne.s32.totalorder %s1041_s27, %s1042_s30  ;;  %p1048_p2 = scmp.lt.s32.totalorder %s1046_s10, %s1042_s30 }
  0x37   : > { %v464_v12 = vrot.slane %v463_v8, 4  ;;  %874 = vmatpush.bf16.msra.mxu2 %v860_v18  ;;  %v411_v49 = vunpack.c.l.bf16 %v288_v47  ;;  %v412_v51 = vunpack.c.h.bf16 %v288_v47 }
  0x38   : > { %v455_v14 = vrot.slane %v454_v11, 4  ;;  %p1044_p4 = pnand %p1043_p1, %p1203_p3  ;;  %p1049_p10 = por %p1048_p2, %p1047_p9 }
  0x39   : > { %v465_v15 = vadd.f32 %v464_v12, %v463_v8  ;;  %392 = vmatpush.bf16.msra.mxu0 %v860_v18  ;;  %546 = vmatpush.bf16.msra.mxu1 %v868_v37 }
  0x3a   : > { %v456_v16 = vadd.f32 %v455_v14, %v454_v11  ;;  %p1045_p11 = pneg %p1044_p4 }
  0x3b   : > { %v466_v17 = vrot.slane %v465_v15, 2  ;;  %875 = vmatpush.bf16.msra.mxu2 %v859_v22 }
  0x3c   : > { %430 = vperm.xlu1 %943, %v293_v3   ;;  %420 = vperm.xlu0 %942, %v291_v7   ;;  %v457_v19 = vrot.slane %v456_v16, 2  ;;  %p1050_p12 = pnand %p1049_p10, %p1045_p11 }
  0x3d   : > { %v467_v20 = vadd.f32 %v466_v17, %v465_v15  ;;  %393 = vmatpush.bf16.msra.mxu0 %v859_v22  ;;  %547 = vmatpush.bf16.msra.mxu1 %v867_v39 }
  0x3e   : > { %v458_v21 = vadd.f32 %v457_v19, %v456_v16 }
  0x3f   : > { %v468_v23 = vrot.slane %v467_v20, 1  ;;  %876 = vmatpush.bf16.msra.mxu2 %v858_v26 }
  0x40   : > { %v459_v24 = vrot.slane %v458_v21, 1 }
  0x41   : > { %v469_v27 = vadd.f32 %v468_v23, %v467_v20  ;;  %394 = vmatpush.bf16.msra.mxu0 %v858_v26  ;;  %548 = vmatpush.bf16.msra.mxu1 %v866_v40 }
  0x42   : > { %v460_v25 = vadd.f32 %v459_v24, %v458_v21  ;;  %v945_v21 = vld [vmem:[%s1349_s4] ss:$0 sm:$0xff] }
  0x43   : > { %v471_v29 = vmax.f32 %v469_v27, 1.0  ;;  %877 = vmatpush.bf16.msra.mxu2 %v857_v32 }
  0x44   : > { %v470_v28 = vmax.f32 %v460_v25, 1.0 }
  0x45   : > { %395 = vmatpush.bf16.msra.mxu0 %v857_v32  ;;  %549 = vmatpush.bf16.msra.mxu1 %v865_v42 }
  0x46   : > { %946 = vrcp.f32 %v470_v28 }
  0x47   : > { %948 = vrcp.f32 %v471_v29  ;;  %878 = vmatpush.bf16.msra.mxu2 %v856_v34 }
  0x49   : > { %396 = vmatpush.bf16.msra.mxu0 %v856_v34  ;;  %550 = vmatpush.bf16.msra.mxu1 %v864_v43 }
  0x4b   : > { %879 = vmatpush.bf16.msra.mxu2 %v855_v36 }
  0x4c   : > { %v947_v30 = vpop.eup %946 }
  0x4d   : > { %476 = vperm.xlu2 %944, %v947_v30   ;;  %v949_v31 = vpop.eup %948  ;;  %397 = vmatpush.bf16.msra.mxu0 %v855_v36 }
  0x4e   : > { %403 = vmatmul.bf16.vlgmr.msra.gmra.mxu2 %v854_v38  ;;  %551 = vmatpush.bf16.msra.mxu1 %v863_v44 }
  0x50   : > { %398 = vmatmul.bf16.vlgmr.msra.gmra.mxu0 %v853_v41 }
  0x55   : > { %481 = vperm.xlu2 %944, %v949_v31  }
  0xa6   : > { %v426_v45 = vpop.permute.xlu1 %425  ;;  %v416_v46 = vpop.permute.xlu0 %415 }
  0xa7   : > { %v435_v55 = vmul.f32 %v426_v45, %v411_v49  ;;  %v433_v56 = vmul.f32 %v416_v46, %v409_v50  ;;  %v477_v63 = vpop.permute.xlu2 %476 }
  0xae   : > { %v431_v53 = vpop.permute.xlu1 %430  ;;  %v421_v54 = vpop.permute.xlu0 %420 }
  0xaf   : > { %v436_v57 = vmul.f32 %v431_v53, %v412_v51  ;;  %v434_v58 = vmul.f32 %v421_v54, %v410_v52  ;;  %v482_v10 = vpop.permute.xlu2 %481 }
  0xb1   : > { %v444_v59 = vadd.f32 %v436_v57, %v435_v55  ;;  %v437_v60 = vadd.f32 %v434_v58, %v433_v56 }
  0xb3   : > { %v445_v61 = vrot.slane %v444_v59, 4  ;;  %v438_v62 = vrot.slane %v437_v60, 4 }
  0xb5   : > { %v446_v0 = vadd.f32 %v445_v61, %v444_v59  ;;  %v439_v1 = vadd.f32 %v438_v62, %v437_v60 }
  0xb7   : > { %v440_v2 = vrot.slane %v439_v1, 2  ;;  %v447_v3 = vrot.slane %v446_v0, 2 }
  0xb9   : > { %v441_v4 = vadd.f32 %v440_v2, %v439_v1  ;;  %v448_v5 = vadd.f32 %v447_v3, %v446_v0 }
  0xbb   : > { %v442_v6 = vrot.slane %v441_v4, 1  ;;  %v449_v7 = vrot.slane %v448_v5, 1 }
  0xbd   : > { %v443_v8 = vadd.f32 %v442_v6, %v441_v4  ;;  %v450_v9 = vadd.f32 %v449_v7, %v448_v5 }
  0xbf   : > { %v484_v11 = vmul.f32 %v477_v63, %v443_v8  ;;  %v485_v12 = vmul.f32 %v482_v10, %v450_v9 }
  0xc1   : > { %v486_v13 = vpack.c.bf16 %v484_v11, %v484_v11  ;;  %v487_v14 = vpack.c.bf16 %v485_v12, %v485_v12 }
  0xc3   : > { %v490_v15 = vunpack.c.l.b16 %v486_v13  ;;  %v491_v16 = vunpack.c.l.b16 %v487_v14 }
  0xc5   : > { %v493_v17 = vsel %vm492_vm1, %v491_v16, %v490_v15 }
  0xc6   : > { %v494_v18 = vpack.c.b16 %v493_v17, %v493_v17 }
  0xc8   : > { %552 = vmatmul.bf16.vlgmr.msra.gmra.mxu1 %v494_v18 }
  0xcd   : > { %v399_v19 = vpop.f32.mrf.mxu0 }
  0xce   : > { %v400_v25 = vadd.f32 %v945_v21, %v399_v19 }
  0xd1   : > { %v404_v20 = vpop.f32.mrf.mxu2 }
  0xd2   : > { %v405_v29 = vadd.f32 %v945_v21, %v404_v20 }
  0xd5   : > { %v401_v22 = vpop.f32.mrf.mxu0 }
  0xd6   : > { %v402_v26 = vadd.f32 %v945_v21, %v401_v22 }
  0xd9   : > { %v406_v23 = vpop.f32.mrf.mxu2 }
  0xda   : > { %v407_v30 = vadd.f32 %v945_v21, %v406_v23 }
 0x145   : > { %v553_v24 = vpop.f32.mrf.mxu1 }
 0x146   : > { %v558_v27 = vrot.slane %v553_v24, 1  ;;  %v559_v28 = vperm.slane %v553_v24, 0 }
 0x148   : > { %v560_v31 = vperm.slane %v558_v27, 0  ;;  %v563_v32 = vadd.f32 %v559_v28, %v400_v25  ;;  %v564_v33 = vadd.f32 %v559_v28, %v402_v26 }
 0x14a   : > { %v565_v34 = vadd.f32 %v560_v31, %v405_v29  ;;  %v566_v35 = vadd.f32 %v560_v31, %v407_v30  ;;  %v843_v36 = vmul.f32 -1.442695, %v563_v32  ;;  %v844_v37 = vmul.f32 -1.442695, %v564_v33 }
 0x14c   : > { %950 = vpow2.f32 %v843_v36  ;;  %v845_v38 = vmul.f32 -1.442695, %v565_v34  ;;  %v846_v39 = vmul.f32 -1.442695, %v566_v35 }
 0x14d   : > { %952 = vpow2.f32 %v844_v37  ;;  %v555_v40 = vpop.f32.mrf.mxu1 }
 0x14e   : > { %954 = vpow2.f32 %v845_v38 }
 0x14f   : > { %956 = vpow2.f32 %v846_v39 }
 0x152   : > { %v951_v41 = vpop.eup %950 }
 0x153   : > { %v953_v42 = vpop.eup %952  ;;  %v579_v43 = vadd.f32 1.0, %v951_v41 }
 0x154   : > { %v955_v44 = vpop.eup %954  ;;  %v580_v45 = vadd.f32 1.0, %v953_v42 }
 0x155   : > { %v957_v46 = vpop.eup %956  ;;  %v581_v47 = vadd.f32 1.0, %v955_v44  ;;  %958 = vrcp.f32 %v579_v43  ;;  %v592_v49 = vand.u32 2147483647, %v579_v43  ;;  %v594_v51 = vand.u32 2147483648, %v579_v43 }
 0x156   : > { %v1282_v48 = vadd.f32 1.0, %v957_v46  ;;  %960 = vrcp.f32 %v580_v45  ;;  %vm588_vm2 = vweird.f32 %v579_v43  ;;  %vm603_vm3 = vweird.f32 %v580_v45 }
 0x157   : > { %962 = vrcp.f32 %v581_v47  ;;  %v607_v56 = vand.u32 2147483647, %v580_v45  ;;  %vm1286_vm4 = vcmp.eq.f32.partialorder %v592_v49, 8.507059e+37  ;;  %v609_v59 = vand.u32 2147483648, %v580_v45 }
 0x158   : > { %964 = vrcp.f32 %v1282_v48  ;;  %v595_v62 = vor.u32 1.1754944e-38, %v594_v51  ;;  %vm618_vm5 = vweird.f32 %v581_v47  ;;  %v622_v0 = vand.u32 2147483647, %v581_v47 }
 0x159   : > { %vm1292_vm8 = vcmp.eq.f32.partialorder %v607_v56, 8.507059e+37  ;;  %v624_v6 = vand.u32 2147483648, %v581_v47  ;;  %v610_v11 = vor.u32 1.1754944e-38, %v609_v59  ;;  %v637_v12 = vand.u32 2147483647, %v1282_v48 }
 0x15a   : > { %v639_v13 = vand.u32 2147483648, %v1282_v48  ;;  %vm633_vm14 = vweird.f32 %v1282_v48  ;;  %vm623_vm15 = vcmp.eq.f32.partialorder %v622_v0, 8.507059e+37 }
 0x15b   : > { %v959_v50 = vpop.eup %958  ;;  %v625_v19 = vor.u32 1.1754944e-38, %v624_v6  ;;  %vm638_vm1 = vcmp.eq.f32.partialorder %v637_v12, 8.507059e+37 }
 0x15c   : > { %v961_v52 = vpop.eup %960  ;;  %v584_v53 = vmul.f32 %v959_v50, %v579_v43  ;;  %vm589_vm6 = vweird.f32 %v959_v50  ;;  %v640_v24 = vor.u32 1.1754944e-38, %v639_v13 }
 0x15d   : > { %v963_v54 = vpop.eup %962  ;;  %v599_v55 = vmul.f32 %v961_v52, %v580_v45  ;;  %vm604_vm7 = vweird.f32 %v961_v52  ;;  %vm590_vm10 = vmor %vm588_vm2, %vm589_vm6 }
 0x15e   : > { %v585_v57 = vsub.f32 1.0, %v584_v53  ;;  %v614_v60 = vmul.f32 %v963_v54, %v581_v47  ;;  %v965_v61 = vpop.eup %964  ;;  %vm619_vm9 = vweird.f32 %v963_v54  ;;  %vm605_vm11 = vmor %vm603_vm3, %vm604_vm7 }
 0x15f   : > { %v600_v63 = vsub.f32 1.0, %v599_v55  ;;  %v629_v3 = vmul.f32 %v965_v61, %v1282_v48  ;;  %vm634_vm12 = vweird.f32 %v965_v61  ;;  %vm620_vm13 = vmor %vm618_vm5, %vm619_vm9 }
 0x160   : > { %v586_v1 = vmul.f32 %v959_v50, %v585_v57  ;;  %v615_v2 = vsub.f32 1.0, %v614_v60  ;;  %vm635_vm0 = vmor %vm633_vm14, %vm634_vm12 }
 0x161   : > { %v601_v4 = vmul.f32 %v961_v52, %v600_v63  ;;  %v630_v9 = vsub.f32 1.0, %v629_v3 }
 0x162   : > { %v587_v7 = vadd.f32 %v959_v50, %v586_v1  ;;  %v616_v8 = vmul.f32 %v963_v54, %v615_v2 }
 0x163   : > { %v602_v10 = vadd.f32 %v961_v52, %v601_v4  ;;  %v631_v16 = vmul.f32 %v965_v61, %v630_v9 }
 0x164   : > { %v591_v14 = vsel %vm590_vm10, %v959_v50, %v587_v7  ;;  %v617_v15 = vadd.f32 %v963_v54, %v616_v8 }
 0x165   : > { %v596_v17 = vsel %vm1286_vm4, %v595_v62, %v591_v14  ;;  %v606_v18 = vsel %vm605_vm11, %v961_v52, %v602_v10  ;;  %v632_v22 = vadd.f32 %v965_v61, %v631_v16 }
 0x166   : > { %v611_v20 = vsel %vm1292_vm8, %v610_v11, %v606_v18  ;;  %v621_v21 = vsel %vm620_vm13, %v963_v54, %v617_v15  ;;  %643 = vst [vmem:[%s277_s11] sm:$0xff] %v596_v17 }
 0x167   : > { %v626_v23 = vsel %vm623_vm15, %v625_v19, %v621_v21  ;;  %644 = vst [vmem:[%s277_s11 + $0x8] sm:$0xff] %v611_v20  ;;  %v636_v25 = vsel %vm635_vm0, %v965_v61, %v632_v22 }
 0x168   : > { %645 = vst [vmem:[%s277_s11 + $0x10] sm:$0xff] %v626_v23  ;;  %v641_v26 = vsel %vm638_vm1, %v640_v24, %v636_v25 }
 0x169   : > { %646 = vst [vmem:[%s277_s11 + $0x18] sm:$0xff] %v641_v26 }
 0x16a   : > { %1053 = shalt.err (!%p1050_p12)
}
 0x16b   : > { %s1102_s28 = smov 128   ;;  %s1103_s16 = smov 8  }
 0x16c   : > { %886 = dma.vmem_to_hbm [thread:$0]  (%p1203_p3), %s661_s8, 512, %s663_s29, %s648_s9, %s1102_s28, %s1102_s28, %s1103_s16  }
 0x16d PF: > { %s677_s23 = sand.u32 1, %s1084_s18   ;;  %p1362_p13 = scmp.ge.s32.totalorder %s1096_s21, 2 }
 0x16e   : > { %s678_s26 = scalar_lea.sflag [#allocation4], %s677_s23 }
 0x16f   : > { %p897_p0 = pnand %p1362_p13, %p1169_p6 }
 0x171   : > { %p898_p5 = pneg %p897_p0 }
 0x173   : > { %1079 = dma.done.wait (%p898_p5), %s678_s26, 512  }
 0x174   : > { %1081 = vsyncadd (%p898_p5), %s678_s26, 4294966784  ;;  %p19_p7 = scmp.ge.s32.totalorder %s1187_s7, 4   ;;  %s1363_s18 = smov %s1088_s19 }
 0x175   : > { %s1364_s19 = smov %s1092_s20  ;;  %s1365_s20 = smov %s1199_s12 }
 0x176   : > { %s1366_s21 = smov %s1187_s7  ;;  %21 = sbr.rel (!%p19_p7) target bundleno = 6 (0x6), region = 92 }
 0x17b   :  { %684 = vsyncpa [#allocation3], 1 }
 0x17c   :  { %686 = vsyncpa [#allocation3 + $0x1], 1 }
 0x17d   :  { %687 = vsyncpa [#allocation6], 1 }
 0x17e   :  { %688 = vsyncpa [#allocation4], 1 }
 0x17f   :  { %690 = vsyncpa [#allocation4 + $0x1], 1 }

</bundles_post_ra>
